<compile_context>
chip_gen: v7x
topology: tpu7x:2x2x1
jax: 0.10.0
libtpu: 0.0.40
codegen_flags: <defaults>
</compile_context>

<pallas_src>
import math

import jax
import jax.numpy as jnp
from jax import lax
from jax.experimental import pallas as pl
from jax.experimental.pallas import tpu as pltpu

# ---------------- config (small, HawkConfig-consistent) ----------------
HIDDEN = 32
INTER = 64
RECURRENT = 32
N_BLOCKS = 4
CONV_WIDTH = 4
BATCH = 2
SEQ = 8            # power of two: in-kernel position mask uses row & (SEQ-1)
EPS = 1e-6

_VMEM = pl.BlockSpec(memory_space=pltpu.MemorySpace.VMEM)


# ---------------- in-kernel math helpers ----------------
def _erf(x):
    # Abramowitz & Stegun 7.1.26, |abs err| <= 1.5e-7 -> f32-accurate erf
    # (matches torch's exact erf-based F.gelu within float32 precision).
    a1, a2, a3 = 0.254829592, -0.284496736, 1.421413741
    a4, a5, p = -1.453152027, 1.061405429, 0.3275911
    s = jnp.where(x < 0.0, -1.0, 1.0)
    z = jnp.abs(x)
    t = 1.0 / (1.0 + p * z)
    poly = t * (a1 + t * (a2 + t * (a3 + t * (a4 + t * a5))))
    return s * (1.0 - poly * jnp.exp(-z * z))


def _gelu(x):
    return 0.5 * x * (1.0 + _erf(x * 0.7071067811865476))


def _sigmoid(x):
    # Exact divide (kept off pl.reciprocal(approx=True)) so the reference
    # allclose margin stays wide; not on the critical path after the scan rework.
    return 1.0 / (1.0 + jnp.exp(-x))


def _rms(x, w):
    return x * lax.rsqrt(jnp.mean(x * x, axis=-1, keepdims=True) + EPS) * w


# ---------------- fused RNNLayer kernel ----------------
def rnn_layer_kernel(x_ref, vecs_ref, wxy_ref, igag_ref, hawkw_ref, gup_ref,
                     mlpw_ref, o_ref):
    # vecs_ref rows (width 2R, zero-padded):
    #   0: input_norm_w   1: post_norm_w   2: conv_b   3: -8*softplus(a_param)
    #   4..4+CW-1: conv_w[0..CW-1]         4+CW: [ig_b | ag_b]
    BS, H = x_ref.shape
    R = hawkw_ref.shape[0]
    I = gup_ref.shape[1] // 2
    CW = CONV_WIDTH
    S = SEQ

    x = x_ref[...]                                                   # [BS, H]

    innw = vecs_ref[0:1, :H]
    postnw = vecs_ref[1:2, :H]
    convb = vecs_ref[2:3, :R]
    c_neg = vecs_ref[3:4, :R]
    igag_b = vecs_ref[4 + CW:5 + CW, :]                              # [1, 2R]

    # position of each row within its length-S sequence (S is a power of two)
    row = lax.broadcasted_iota(jnp.int32, (BS, R), 0)
    pos = jnp.bitwise_and(row, S - 1)

    # ---- input RMSNorm + fused x|y projection (one MXU push) ----
    xn = _rms(x, innw)
    xy = jnp.dot(xn, wxy_ref[...], preferred_element_type=jnp.float32)   # [BS, 2R]
    xr = xy[:, :R]
    y = xy[:, R:]

    # ---- causal depthwise conv: register-resident, sublane rolls on XLU ----
    xc = convb + xr * vecs_ref[3 + CW:4 + CW, :R]                    # lag 0: conv_w[CW-1]
    for lag in range(1, CW):
        w_row = vecs_ref[3 + CW - lag:4 + CW - lag, :R]              # conv_w[CW-1-lag]
        shifted = pltpu.roll(xr, shift=lag, axis=0)
        xc = xc + jnp.where(pos >= lag, shifted * w_row, 0.0)

    # ---- fused RG-LRU input/a gates (one MXU push, one sigmoid pass) ----
    g = jnp.dot(xc, igag_ref[...], preferred_element_type=jnp.float32) + igag_b
    g = _sigmoid(g)                                                  # [BS, 2R]
    gate_x = g[:, :R]
    gate_a = g[:, R:]

    # ---- RG-LRU coefficients (softplus hoisted to glue; NaN-safe multiplier) ----
    a = jnp.exp(gate_a * c_neg)                                      # c_neg <= 0
    b = xc * gate_x * jnp.sqrt(jnp.maximum(1.0 - a * a, 0.0))

    # ---- segmented log-depth linear scan: h[t] = a[t]*h[t-1] + b[t], h[-1]=0 ----
    # log2(S) rounds of whole-tile masked updates; both sequences advance in
    # parallel; rolls ride the XLU slot; masks stop cross-sequence combination.
    k = 1
    while k < S:
        a_prev = pltpu.roll(a, shift=k, axis=0)
        b_prev = pltpu.roll(b, shift=k, axis=0)
        valid = pos >= k
        b = b + jnp.where(valid, a * b_prev, 0.0)
        a = a * jnp.where(valid, a_prev, 1.0)
        k *= 2
    h = b                                                            # [BS, R]

    # ---- Hawk epilogue: resid_proj(gelu(y) * h) + residual ----
    h1 = x + jnp.dot(_gelu(y) * h, hawkw_ref[...],
                     preferred_element_type=jnp.float32)

    # ---- post-recurrent RMSNorm + fused gate|up MLP + residual ----
    hn = _rms(h1, postnw)
    gu = jnp.dot(hn, gup_ref[...], preferred_element_type=jnp.float32)   # [BS, 2I]
    mid = _gelu(gu[:, :I]) * gu[:, I:]
    o_ref[...] = h1 + jnp.dot(mid, mlpw_ref[...],
                              preferred_element_type=jnp.float32)


# ---------------- wrapper ----------------
@jax.jit
def rnn_layer_forward(kparams, x):
    B, S, H = x.shape
    BS = B * S
    out = pl.pallas_call(
        rnn_layer_kernel,
        out_shape=jax.ShapeDtypeStruct((BS, H), jnp.float32),
        in_specs=[_VMEM] * 7,
        out_specs=_VMEM,
    )(
        x.reshape(BS, H),
        kparams["vecs"],
        kparams["wxy"],
        kparams["igag_w"],
        kparams["hawk_resid_w"],
        kparams["gup_w"],
        kparams["mlp_resid_w"],
    )
    return out.reshape(B, S, H)


# ---------------- glue: pack logical params into kernel operands ----------------
def pack_params(p):
    R, H, CW = RECURRENT, HIDDEN, CONV_WIDTH
    W = 2 * R

    def row(v):
        v = jnp.asarray(v, jnp.float32).reshape(-1)
        return jnp.pad(v, (0, W - v.shape[0]))

    vec_rows = [row(p["input_norm_w"]), row(p["post_norm_w"]),
                row(p["conv_b"]), row(p["c_neg8sp"])]
    vec_rows += [row(p["conv_w"][i]) for i in range(CW)]
    vec_rows += [row(jnp.concatenate([p["ig_b"], p["ag_b"]]))]
    return {
        "vecs": jnp.stack(vec_rows, axis=0),                          # [5+CW, 2R]
        "wxy": jnp.concatenate([p["wx"], p["wy"]], axis=1),           # [H, 2R]
        "igag_w": jnp.concatenate([p["ig_w"], p["ag_w"]], axis=1),    # [R, 2R]
        "hawk_resid_w": p["hawk_resid_w"],                            # [R, H]
        "gup_w": jnp.concatenate([p["gate_w"], p["up_w"]], axis=1),   # [H, 2I]
        "mlp_resid_w": p["mlp_resid_w"],                              # [I, H]
    }


# ---------------- parameters (deterministic, in-script) ----------------
def block_diag_expand(w_blocks):
    # [NB, BW, BW] -> dense block-diagonal [NB*BW, NB*BW] so BlockDiagonalLinear
    # becomes an ordinary matmul in the kernel (numerically identical).
    nb, bw, _ = w_blocks.shape
    full = jnp.zeros((nb * bw, nb * bw), jnp.float32)
    for h in range(nb):
        full = full.at[h * bw:(h + 1) * bw, h * bw:(h + 1) * bw].set(w_blocks[h])
    return full


def init_params(key):
    def normal(k, shape, std):
        return std * jax.random.normal(k, shape, dtype=jnp.float32)

    keys = iter(jax.random.split(key, 8))
    bw = RECURRENT // N_BLOCKS
    wxy = normal(next(keys), (HIDDEN, 2 * RECURRENT), 1.0 / math.sqrt(HIDDEN))
    gup = normal(next(keys), (HIDDEN, 2 * INTER), 1.0 / math.sqrt(HIDDEN))
    # rnn_param_init(min_rad=0.9, max_rad=0.999) under the softplus transform
    u = jax.random.uniform(next(keys), (RECURRENT,), jnp.float32,
                           0.9 ** 2 + 1e-8, 0.999 ** 2 + 1e-8)
    a_param = jnp.log(jnp.exp(-0.5 * jnp.log(u)) - 1.0)
    params = {
        "input_norm_w": jnp.ones((HIDDEN,), jnp.float32),
        "post_norm_w": jnp.ones((HIDDEN,), jnp.float32),
        "wx": wxy[:, :RECURRENT], "wy": wxy[:, RECURRENT:],
        "conv_w": normal(next(keys), (CONV_WIDTH, RECURRENT), 1.0 / math.sqrt(CONV_WIDTH)),
        "conv_b": jnp.zeros((RECURRENT,), jnp.float32),
        "ig_w": block_diag_expand(normal(next(keys), (N_BLOCKS, bw, bw), 1.0 / math.sqrt(bw))),
        "ig_b": jnp.zeros((RECURRENT,), jnp.float32),
        "ag_w": block_diag_expand(normal(next(keys), (N_BLOCKS, bw, bw), 1.0 / math.sqrt(bw))),
        "ag_b": jnp.zeros((RECURRENT,), jnp.float32),
        # NOTE: resid_proj weights are zero-init in the PyTorch module; small random
        # values keep the kernel output non-trivial for this test.
        "hawk_resid_w": normal(next(keys), (RECURRENT, HIDDEN), 0.02),
        "gate_w": gup[:, :INTER], "up_w": gup[:, INTER:],
        "mlp_resid_w": normal(next(keys), (INTER, HIDDEN), 0.02),
        # hoisted per-layer constant: -8 * softplus(a_param)  (stable jax.nn.softplus)
        "c_neg8sp": (-8.0 * jax.nn.softplus(a_param)).astype(jnp.float32),
    }
    return params


# ---------------- pure-JAX reference (for correctness check) ----------------
def _reference_forward(params, x):
    def rms(v, w):
        return v * lax.rsqrt(jnp.mean(v * v, axis=-1, keepdims=True) + EPS) * w

    B, S, H = x.shape
    resid = x
    hn = rms(x, params["input_norm_w"])
    xr = hn @ params["wx"]
    y = hn @ params["wy"]
    w = params["conv_w"]
    CW = w.shape[0]
    xc = params["conv_b"] + xr * w[CW - 1]
    for lag in range(1, CW):
        shifted = jnp.pad(xr, ((0, 0), (lag, 0), (0, 0)))[:, :S, :]
        xc = xc + shifted * w[CW - 1 - lag]
    gate_x = jax.nn.sigmoid(xc @ params["ig_w"] + params["ig_b"])
    gate_a = jax.nn.sigmoid(xc @ params["ag_w"] + params["ag_b"])
    log_a = gate_a * params["c_neg8sp"]
    a = jnp.exp(log_a)
    b = xc * gate_x * jnp.sqrt(jnp.maximum(1.0 - a * a, 0.0))

    def step(h_prev, ab):
        at, bt = ab
        h_new = at * h_prev + bt
        return h_new, h_new

    _, hs = lax.scan(step, jnp.zeros((B, RECURRENT), jnp.float32),
                     (jnp.swapaxes(a, 0, 1), jnp.swapaxes(b, 0, 1)))
    hseq = jnp.swapaxes(hs, 0, 1)
    h1 = resid + (jax.nn.gelu(y, approximate=False) * hseq) @ params["hawk_resid_w"]
    hn2 = rms(h1, params["post_norm_w"])
    gate = hn2 @ params["gate_w"]
    up = hn2 @ params["up_w"]
    return h1 + (jax.nn.gelu(gate, approximate=False) * up) @ params["mlp_resid_w"]


if __name__ == "__main__":
    key = jax.random.PRNGKey(0)
    pkey, xkey = jax.random.split(key)
    params = init_params(pkey)
    kparams = pack_params(params)
    x = jax.random.normal(xkey, (BATCH, SEQ, HIDDEN), dtype=jnp.float32)

    out = jax.block_until_ready(rnn_layer_forward(kparams, x))
    assert out.shape == (BATCH, SEQ, HIDDEN)
    assert bool(jnp.all(jnp.isfinite(out)))

    ref = _reference_forward(params, x)
    assert bool(jnp.allclose(out, ref, atol=1e-3, rtol=1e-3)), \
        float(jnp.max(jnp.abs(out - ref)))
    print("KERNEL_OK")
</pallas_src>

<mosaic_0001>
module attributes {stable_mosaic.version = 11 : i64} {
  func.func @rnn_layer_kernel(%arg0: memref<16x32xf32, #tpu.memory_space<vmem>>, %arg1: memref<9x64xf32, #tpu.memory_space<vmem>>, %arg2: memref<32x64xf32, #tpu.memory_space<vmem>>, %arg3: memref<32x64xf32, #tpu.memory_space<vmem>>, %arg4: memref<32x32xf32, #tpu.memory_space<vmem>>, %arg5: memref<32x128xf32, #tpu.memory_space<vmem>>, %arg6: memref<64x32xf32, #tpu.memory_space<vmem>>, %arg7: memref<16x32xf32, #tpu.memory_space<vmem>>) attributes {dimension_semantics = [], scalar_prefetch = 0 : i64, scratch_operands = 0 : i64, tpu.core_type = #tpu.core_type<tc>} {
    %c0 = arith.constant 0 : index
    %c0_0 = arith.constant 0 : index
    %0 = vector.load %arg0[%c0, %c0_0] : memref<16x32xf32, #tpu.memory_space<vmem>>, vector<16x32xf32>
    %c0_1 = arith.constant 0 : index
    %c0_2 = arith.constant 0 : index
    %1 = vector.load %arg1[%c0_1, %c0_2] : memref<9x64xf32, #tpu.memory_space<vmem>>, vector<1x32xf32>
    %c1 = arith.constant 1 : index
    %c0_3 = arith.constant 0 : index
    %2 = vector.load %arg1[%c1, %c0_3] : memref<9x64xf32, #tpu.memory_space<vmem>>, vector<1x32xf32>
    %c2 = arith.constant 2 : index
    %c0_4 = arith.constant 0 : index
    %3 = vector.load %arg1[%c2, %c0_4] : memref<9x64xf32, #tpu.memory_space<vmem>>, vector<1x32xf32>
    %c3 = arith.constant 3 : index
    %c0_5 = arith.constant 0 : index
    %4 = vector.load %arg1[%c3, %c0_5] : memref<9x64xf32, #tpu.memory_space<vmem>>, vector<1x32xf32>
    %c8 = arith.constant 8 : index
    %c0_6 = arith.constant 0 : index
    %5 = vector.load %arg1[%c8, %c0_6] : memref<9x64xf32, #tpu.memory_space<vmem>>, vector<1x64xf32>
    %6 = tpu.iota {dimensions = array<i32: 0>} : vector<16x32xi32>
    %c7_i32 = arith.constant 7 : i32
    %7 = vector.broadcast %c7_i32 : i32 to vector<16x32xi32>
    %8 = arith.andi %6, %7 : vector<16x32xi32>
    %9 = arith.mulf %0, %0 : vector<16x32xf32>
    %cst = arith.constant dense<0.000000e+00> : vector<16xf32>
    %10 = vector.multi_reduction <add>, %9, %cst [1] : vector<16x32xf32> to vector<16xf32>
    %11 = vector.shape_cast %10 : vector<16xf32> to vector<16x1xf32>
    %cst_7 = arith.constant 3.200000e+01 : f32
    %12 = vector.broadcast %cst_7 : f32 to vector<16x1xf32>
    %13 = arith.divf %11, %12 : vector<16x1xf32>
    %cst_8 = arith.constant 9.99999997E-7 : f32
    %14 = vector.broadcast %cst_8 : f32 to vector<16x1xf32>
    %15 = arith.addf %13, %14 : vector<16x1xf32>
    %16 = math.rsqrt %15 : vector<16x1xf32>
    %17 = vector.broadcast %16 : vector<16x1xf32> to vector<16x32xf32>
    %18 = arith.mulf %0, %17 : vector<16x32xf32>
    %19 = vector.broadcast %1 : vector<1x32xf32> to vector<16x32xf32>
    %20 = arith.mulf %18, %19 : vector<16x32xf32>
    %c0_9 = arith.constant 0 : index
    %c0_10 = arith.constant 0 : index
    %21 = vector.load %arg2[%c0_9, %c0_10] : memref<32x64xf32, #tpu.memory_space<vmem>>, vector<32x64xf32>
    %cst_11 = arith.constant dense<0.000000e+00> : vector<16x64xf32>
    %22 = tpu.matmul %20, %21, %cst_11 {dimension_numbers = #tpu.dot_dimension_numbers<[1], [0], [0], [1], [0, 0, 1, 1], [], []>} : vector<16x32xf32>, vector<32x64xf32>, vector<16x64xf32> -> vector<16x64xf32>
    %23 = vector.extract_strided_slice %22 {offsets = [0, 0], sizes = [16, 32], strides = [1, 1]} : vector<16x64xf32> to vector<16x32xf32>
    %24 = vector.extract_strided_slice %22 {offsets = [0, 32], sizes = [16, 32], strides = [1, 1]} : vector<16x64xf32> to vector<16x32xf32>
    %c7 = arith.constant 7 : index
    %c0_12 = arith.constant 0 : index
    %25 = vector.load %arg1[%c7, %c0_12] : memref<9x64xf32, #tpu.memory_space<vmem>>, vector<1x32xf32>
    %26 = vector.broadcast %25 : vector<1x32xf32> to vector<16x32xf32>
    %27 = arith.mulf %23, %26 : vector<16x32xf32>
    %28 = vector.broadcast %3 : vector<1x32xf32> to vector<16x32xf32>
    %29 = arith.addf %28, %27 : vector<16x32xf32>
    %c6 = arith.constant 6 : index
    %c0_13 = arith.constant 0 : index
    %30 = vector.load %arg1[%c6, %c0_13] : memref<9x64xf32, #tpu.memory_space<vmem>>, vector<1x32xf32>
    %c1_i32 = arith.constant 1 : i32
    %31 = tpu.dynamic_rotate %23 by %c1_i32 dim 0 : vector<16x32xf32>, i32 -> vector<16x32xf32>
    %c1_i32_14 = arith.constant 1 : i32
    %32 = vector.broadcast %c1_i32_14 : i32 to vector<16x32xi32>
    %33 = arith.cmpi sge, %8, %32 : vector<16x32xi32>
    %34 = vector.broadcast %30 : vector<1x32xf32> to vector<16x32xf32>
    %35 = arith.mulf %31, %34 : vector<16x32xf32>
    %cst_15 = arith.constant 0.000000e+00 : f32
    %36 = vector.broadcast %cst_15 : f32 to vector<16x32xf32>
    %37 = arith.select %33, %35, %36 : vector<16x32xi1>, vector<16x32xf32>
    %38 = arith.addf %29, %37 : vector<16x32xf32>
    %c5 = arith.constant 5 : index
    %c0_16 = arith.constant 0 : index
    %39 = vector.load %arg1[%c5, %c0_16] : memref<9x64xf32, #tpu.memory_space<vmem>>, vector<1x32xf32>
    %c2_i32 = arith.constant 2 : i32
    %40 = tpu.dynamic_rotate %23 by %c2_i32 dim 0 : vector<16x32xf32>, i32 -> vector<16x32xf32>
    %c2_i32_17 = arith.constant 2 : i32
    %41 = vector.broadcast %c2_i32_17 : i32 to vector<16x32xi32>
    %42 = arith.cmpi sge, %8, %41 : vector<16x32xi32>
    %43 = vector.broadcast %39 : vector<1x32xf32> to vector<16x32xf32>
    %44 = arith.mulf %40, %43 : vector<16x32xf32>
    %cst_18 = arith.constant 0.000000e+00 : f32
    %45 = vector.broadcast %cst_18 : f32 to vector<16x32xf32>
    %46 = arith.select %42, %44, %45 : vector<16x32xi1>, vector<16x32xf32>
    %47 = arith.addf %38, %46 : vector<16x32xf32>
    %c4 = arith.constant 4 : index
    %c0_19 = arith.constant 0 : index
    %48 = vector.load %arg1[%c4, %c0_19] : memref<9x64xf32, #tpu.memory_space<vmem>>, vector<1x32xf32>
    %c3_i32 = arith.constant 3 : i32
    %49 = tpu.dynamic_rotate %23 by %c3_i32 dim 0 : vector<16x32xf32>, i32 -> vector<16x32xf32>
    %c3_i32_20 = arith.constant 3 : i32
    %50 = vector.broadcast %c3_i32_20 : i32 to vector<16x32xi32>
    %51 = arith.cmpi sge, %8, %50 : vector<16x32xi32>
    %52 = vector.broadcast %48 : vector<1x32xf32> to vector<16x32xf32>
    %53 = arith.mulf %49, %52 : vector<16x32xf32>
    %cst_21 = arith.constant 0.000000e+00 : f32
    %54 = vector.broadcast %cst_21 : f32 to vector<16x32xf32>
    %55 = arith.select %51, %53, %54 : vector<16x32xi1>, vector<16x32xf32>
    %56 = arith.addf %47, %55 : vector<16x32xf32>
    %c0_22 = arith.constant 0 : index
    %c0_23 = arith.constant 0 : index
    %57 = vector.load %arg3[%c0_22, %c0_23] : memref<32x64xf32, #tpu.memory_space<vmem>>, vector<32x64xf32>
    %cst_24 = arith.constant dense<0.000000e+00> : vector<16x64xf32>
    %58 = tpu.matmul %56, %57, %cst_24 {dimension_numbers = #tpu.dot_dimension_numbers<[1], [0], [0], [1], [0, 0, 1, 1], [], []>} : vector<16x32xf32>, vector<32x64xf32>, vector<16x64xf32> -> vector<16x64xf32>
    %59 = vector.broadcast %5 : vector<1x64xf32> to vector<16x64xf32>
    %60 = arith.addf %58, %59 : vector<16x64xf32>
    %cst_25 = arith.constant 0.000000e+00 : f32
    %61 = vector.broadcast %cst_25 : f32 to vector<16x64xf32>
    %62 = arith.subf %61, %60 : vector<16x64xf32>
    %63 = math.exp %62 : vector<16x64xf32>
    %cst_26 = arith.constant 1.000000e+00 : f32
    %64 = vector.broadcast %cst_26 : f32 to vector<16x64xf32>
    %65 = arith.addf %64, %63 : vector<16x64xf32>
    %cst_27 = arith.constant 1.000000e+00 : f32
    %66 = vector.broadcast %cst_27 : f32 to vector<16x64xf32>
    %67 = arith.divf %66, %65 : vector<16x64xf32>
    %68 = vector.extract_strided_slice %67 {offsets = [0, 0], sizes = [16, 32], strides = [1, 1]} : vector<16x64xf32> to vector<16x32xf32>
    %69 = vector.extract_strided_slice %67 {offsets = [0, 32], sizes = [16, 32], strides = [1, 1]} : vector<16x64xf32> to vector<16x32xf32>
    %70 = vector.broadcast %4 : vector<1x32xf32> to vector<16x32xf32>
    %71 = arith.mulf %69, %70 : vector<16x32xf32>
    %72 = math.exp %71 : vector<16x32xf32>
    %73 = arith.mulf %56, %68 : vector<16x32xf32>
    %74 = arith.mulf %72, %72 : vector<16x32xf32>
    %cst_28 = arith.constant 1.000000e+00 : f32
    %75 = vector.broadcast %cst_28 : f32 to vector<16x32xf32>
    %76 = arith.subf %75, %74 : vector<16x32xf32>
    %cst_29 = arith.constant 0.000000e+00 : f32
    %77 = vector.broadcast %cst_29 : f32 to vector<16x32xf32>
    %78 = arith.maximumf %76, %77 : vector<16x32xf32>
    %79 = math.sqrt %78 : vector<16x32xf32>
    %80 = arith.mulf %73, %79 : vector<16x32xf32>
    %c1_i32_30 = arith.constant 1 : i32
    %81 = tpu.dynamic_rotate %72 by %c1_i32_30 dim 0 : vector<16x32xf32>, i32 -> vector<16x32xf32>
    %c1_i32_31 = arith.constant 1 : i32
    %82 = tpu.dynamic_rotate %80 by %c1_i32_31 dim 0 : vector<16x32xf32>, i32 -> vector<16x32xf32>
    %c1_i32_32 = arith.constant 1 : i32
    %83 = vector.broadcast %c1_i32_32 : i32 to vector<16x32xi32>
    %84 = arith.cmpi sge, %8, %83 : vector<16x32xi32>
    %85 = arith.mulf %72, %82 : vector<16x32xf32>
    %cst_33 = arith.constant 0.000000e+00 : f32
    %86 = vector.broadcast %cst_33 : f32 to vector<16x32xf32>
    %87 = arith.select %84, %85, %86 : vector<16x32xi1>, vector<16x32xf32>
    %88 = arith.addf %80, %87 : vector<16x32xf32>
    %cst_34 = arith.constant 1.000000e+00 : f32
    %89 = vector.broadcast %cst_34 : f32 to vector<16x32xf32>
    %90 = arith.select %84, %81, %89 : vector<16x32xi1>, vector<16x32xf32>
    %91 = arith.mulf %72, %90 : vector<16x32xf32>
    %c2_i32_35 = arith.constant 2 : i32
    %92 = tpu.dynamic_rotate %91 by %c2_i32_35 dim 0 : vector<16x32xf32>, i32 -> vector<16x32xf32>
    %c2_i32_36 = arith.constant 2 : i32
    %93 = tpu.dynamic_rotate %88 by %c2_i32_36 dim 0 : vector<16x32xf32>, i32 -> vector<16x32xf32>
    %c2_i32_37 = arith.constant 2 : i32
    %94 = vector.broadcast %c2_i32_37 : i32 to vector<16x32xi32>
    %95 = arith.cmpi sge, %8, %94 : vector<16x32xi32>
    %96 = arith.mulf %91, %93 : vector<16x32xf32>
    %cst_38 = arith.constant 0.000000e+00 : f32
    %97 = vector.broadcast %cst_38 : f32 to vector<16x32xf32>
    %98 = arith.select %95, %96, %97 : vector<16x32xi1>, vector<16x32xf32>
    %99 = arith.addf %88, %98 : vector<16x32xf32>
    %cst_39 = arith.constant 1.000000e+00 : f32
    %100 = vector.broadcast %cst_39 : f32 to vector<16x32xf32>
    %101 = arith.select %95, %92, %100 : vector<16x32xi1>, vector<16x32xf32>
    %102 = arith.mulf %91, %101 : vector<16x32xf32>
    %c4_i32 = arith.constant 4 : i32
    %103 = tpu.dynamic_rotate %99 by %c4_i32 dim 0 : vector<16x32xf32>, i32 -> vector<16x32xf32>
    %c4_i32_40 = arith.constant 4 : i32
    %104 = vector.broadcast %c4_i32_40 : i32 to vector<16x32xi32>
    %105 = arith.cmpi sge, %8, %104 : vector<16x32xi32>
    %106 = arith.mulf %102, %103 : vector<16x32xf32>
    %cst_41 = arith.constant 0.000000e+00 : f32
    %107 = vector.broadcast %cst_41 : f32 to vector<16x32xf32>
    %108 = arith.select %105, %106, %107 : vector<16x32xi1>, vector<16x32xf32>
    %109 = arith.addf %99, %108 : vector<16x32xf32>
    %cst_42 = arith.constant 5.000000e-01 : f32
    %110 = vector.broadcast %cst_42 : f32 to vector<16x32xf32>
    %111 = arith.mulf %110, %24 : vector<16x32xf32>
    %cst_43 = arith.constant 0.707106769 : f32
    %112 = vector.broadcast %cst_43 : f32 to vector<16x32xf32>
    %113 = arith.mulf %24, %112 : vector<16x32xf32>
    %cst_44 = arith.constant 0.000000e+00 : f32
    %114 = vector.broadcast %cst_44 : f32 to vector<16x32xf32>
    %115 = arith.cmpf olt, %113, %114 : vector<16x32xf32>
    %cst_45 = arith.constant -1.000000e+00 : f32
    %cst_46 = arith.constant 1.000000e+00 : f32
    %116 = vector.broadcast %cst_45 : f32 to vector<16x32xf32>
    %117 = vector.broadcast %cst_46 : f32 to vector<16x32xf32>
    %118 = arith.select %115, %116, %117 : vector<16x32xi1>, vector<16x32xf32>
    %119 = math.absf %113 : vector<16x32xf32>
    %cst_47 = arith.constant 0.327591091 : f32
    %120 = vector.broadcast %cst_47 : f32 to vector<16x32xf32>
    %121 = arith.mulf %120, %119 : vector<16x32xf32>
    %cst_48 = arith.constant 1.000000e+00 : f32
    %122 = vector.broadcast %cst_48 : f32 to vector<16x32xf32>
    %123 = arith.addf %122, %121 : vector<16x32xf32>
    %cst_49 = arith.constant 1.000000e+00 : f32
    %124 = vector.broadcast %cst_49 : f32 to vector<16x32xf32>
    %125 = arith.divf %124, %123 : vector<16x32xf32>
    %cst_50 = arith.constant 1.06140542 : f32
    %126 = vector.broadcast %cst_50 : f32 to vector<16x32xf32>
    %127 = arith.mulf %125, %126 : vector<16x32xf32>
    %cst_51 = arith.constant -1.45315206 : f32
    %128 = vector.broadcast %cst_51 : f32 to vector<16x32xf32>
    %129 = arith.addf %128, %127 : vector<16x32xf32>
    %130 = arith.mulf %125, %129 : vector<16x32xf32>
    %cst_52 = arith.constant 1.42141378 : f32
    %131 = vector.broadcast %cst_52 : f32 to vector<16x32xf32>
    %132 = arith.addf %131, %130 : vector<16x32xf32>
    %133 = arith.mulf %125, %132 : vector<16x32xf32>
    %cst_53 = arith.constant -0.284496725 : f32
    %134 = vector.broadcast %cst_53 : f32 to vector<16x32xf32>
    %135 = arith.addf %134, %133 : vector<16x32xf32>
    %136 = arith.mulf %125, %135 : vector<16x32xf32>
    %cst_54 = arith.constant 0.254829586 : f32
    %137 = vector.broadcast %cst_54 : f32 to vector<16x32xf32>
    %138 = arith.addf %137, %136 : vector<16x32xf32>
    %139 = arith.mulf %125, %138 : vector<16x32xf32>
    %cst_55 = arith.constant 0.000000e+00 : f32
    %140 = vector.broadcast %cst_55 : f32 to vector<16x32xf32>
    %141 = arith.subf %140, %119 : vector<16x32xf32>
    %142 = arith.mulf %141, %119 : vector<16x32xf32>
    %143 = math.exp %142 : vector<16x32xf32>
    %144 = arith.mulf %139, %143 : vector<16x32xf32>
    %cst_56 = arith.constant 1.000000e+00 : f32
    %145 = vector.broadcast %cst_56 : f32 to vector<16x32xf32>
    %146 = arith.subf %145, %144 : vector<16x32xf32>
    %147 = arith.mulf %118, %146 : vector<16x32xf32>
    %cst_57 = arith.constant 1.000000e+00 : f32
    %148 = vector.broadcast %cst_57 : f32 to vector<16x32xf32>
    %149 = arith.addf %148, %147 : vector<16x32xf32>
    %150 = arith.mulf %111, %149 : vector<16x32xf32>
    %151 = arith.mulf %150, %109 : vector<16x32xf32>
    %c0_58 = arith.constant 0 : index
    %c0_59 = arith.constant 0 : index
    %152 = vector.load %arg4[%c0_58, %c0_59] : memref<32x32xf32, #tpu.memory_space<vmem>>, vector<32x32xf32>
    %cst_60 = arith.constant dense<0.000000e+00> : vector<16x32xf32>
    %153 = tpu.matmul %151, %152, %cst_60 {dimension_numbers = #tpu.dot_dimension_numbers<[1], [0], [0], [1], [0, 0, 1, 1], [], []>} : vector<16x32xf32>, vector<32x32xf32>, vector<16x32xf32> -> vector<16x32xf32>
    %154 = arith.addf %0, %153 : vector<16x32xf32>
    %155 = arith.mulf %154, %154 : vector<16x32xf32>
    %cst_61 = arith.constant dense<0.000000e+00> : vector<16xf32>
    %156 = vector.multi_reduction <add>, %155, %cst_61 [1] : vector<16x32xf32> to vector<16xf32>
    %157 = vector.shape_cast %156 : vector<16xf32> to vector<16x1xf32>
    %cst_62 = arith.constant 3.200000e+01 : f32
    %158 = vector.broadcast %cst_62 : f32 to vector<16x1xf32>
    %159 = arith.divf %157, %158 : vector<16x1xf32>
    %cst_63 = arith.constant 9.99999997E-7 : f32
    %160 = vector.broadcast %cst_63 : f32 to vector<16x1xf32>
    %161 = arith.addf %159, %160 : vector<16x1xf32>
    %162 = math.rsqrt %161 : vector<16x1xf32>
    %163 = vector.broadcast %162 : vector<16x1xf32> to vector<16x32xf32>
    %164 = arith.mulf %154, %163 : vector<16x32xf32>
    %165 = vector.broadcast %2 : vector<1x32xf32> to vector<16x32xf32>
    %166 = arith.mulf %164, %165 : vector<16x32xf32>
    %c0_64 = arith.constant 0 : index
    %c0_65 = arith.constant 0 : index
    %167 = vector.load %arg5[%c0_64, %c0_65] : memref<32x128xf32, #tpu.memory_space<vmem>>, vector<32x128xf32>
    %cst_66 = arith.constant dense<0.000000e+00> : vector<16x128xf32>
    %168 = tpu.matmul %166, %167, %cst_66 {dimension_numbers = #tpu.dot_dimension_numbers<[1], [0], [0], [1], [0, 0, 1, 1], [], []>} : vector<16x32xf32>, vector<32x128xf32>, vector<16x128xf32> -> vector<16x128xf32>
    %169 = vector.extract_strided_slice %168 {offsets = [0, 0], sizes = [16, 64], strides = [1, 1]} : vector<16x128xf32> to vector<16x64xf32>
    %cst_67 = arith.constant 5.000000e-01 : f32
    %170 = vector.broadcast %cst_67 : f32 to vector<16x64xf32>
    %171 = arith.mulf %170, %169 : vector<16x64xf32>
    %cst_68 = arith.constant 0.707106769 : f32
    %172 = vector.broadcast %cst_68 : f32 to vector<16x64xf32>
    %173 = arith.mulf %169, %172 : vector<16x64xf32>
    %cst_69 = arith.constant 0.000000e+00 : f32
    %174 = vector.broadcast %cst_69 : f32 to vector<16x64xf32>
    %175 = arith.cmpf olt, %173, %174 : vector<16x64xf32>
    %cst_70 = arith.constant -1.000000e+00 : f32
    %cst_71 = arith.constant 1.000000e+00 : f32
    %176 = vector.broadcast %cst_70 : f32 to vector<16x64xf32>
    %177 = vector.broadcast %cst_71 : f32 to vector<16x64xf32>
    %178 = arith.select %175, %176, %177 : vector<16x64xi1>, vector<16x64xf32>
    %179 = math.absf %173 : vector<16x64xf32>
    %cst_72 = arith.constant 0.327591091 : f32
    %180 = vector.broadcast %cst_72 : f32 to vector<16x64xf32>
    %181 = arith.mulf %180, %179 : vector<16x64xf32>
    %cst_73 = arith.constant 1.000000e+00 : f32
    %182 = vector.broadcast %cst_73 : f32 to vector<16x64xf32>
    %183 = arith.addf %182, %181 : vector<16x64xf32>
    %cst_74 = arith.constant 1.000000e+00 : f32
    %184 = vector.broadcast %cst_74 : f32 to vector<16x64xf32>
    %185 = arith.divf %184, %183 : vector<16x64xf32>
    %cst_75 = arith.constant 1.06140542 : f32
    %186 = vector.broadcast %cst_75 : f32 to vector<16x64xf32>
    %187 = arith.mulf %185, %186 : vector<16x64xf32>
    %cst_76 = arith.constant -1.45315206 : f32
    %188 = vector.broadcast %cst_76 : f32 to vector<16x64xf32>
    %189 = arith.addf %188, %187 : vector<16x64xf32>
    %190 = arith.mulf %185, %189 : vector<16x64xf32>
    %cst_77 = arith.constant 1.42141378 : f32
    %191 = vector.broadcast %cst_77 : f32 to vector<16x64xf32>
    %192 = arith.addf %191, %190 : vector<16x64xf32>
    %193 = arith.mulf %185, %192 : vector<16x64xf32>
    %cst_78 = arith.constant -0.284496725 : f32
    %194 = vector.broadcast %cst_78 : f32 to vector<16x64xf32>
    %195 = arith.addf %194, %193 : vector<16x64xf32>
    %196 = arith.mulf %185, %195 : vector<16x64xf32>
    %cst_79 = arith.constant 0.254829586 : f32
    %197 = vector.broadcast %cst_79 : f32 to vector<16x64xf32>
    %198 = arith.addf %197, %196 : vector<16x64xf32>
    %199 = arith.mulf %185, %198 : vector<16x64xf32>
    %cst_80 = arith.constant 0.000000e+00 : f32
    %200 = vector.broadcast %cst_80 : f32 to vector<16x64xf32>
    %201 = arith.subf %200, %179 : vector<16x64xf32>
    %202 = arith.mulf %201, %179 : vector<16x64xf32>
    %203 = math.exp %202 : vector<16x64xf32>
    %204 = arith.mulf %199, %203 : vector<16x64xf32>
    %cst_81 = arith.constant 1.000000e+00 : f32
    %205 = vector.broadcast %cst_81 : f32 to vector<16x64xf32>
    %206 = arith.subf %205, %204 : vector<16x64xf32>
    %207 = arith.mulf %178, %206 : vector<16x64xf32>
    %cst_82 = arith.constant 1.000000e+00 : f32
    %208 = vector.broadcast %cst_82 : f32 to vector<16x64xf32>
    %209 = arith.addf %208, %207 : vector<16x64xf32>
    %210 = arith.mulf %171, %209 : vector<16x64xf32>
    %211 = vector.extract_strided_slice %168 {offsets = [0, 64], sizes = [16, 64], strides = [1, 1]} : vector<16x128xf32> to vector<16x64xf32>
    %212 = arith.mulf %210, %211 : vector<16x64xf32>
    %c0_83 = arith.constant 0 : index
    %c0_84 = arith.constant 0 : index
    %213 = vector.load %arg6[%c0_83, %c0_84] : memref<64x32xf32, #tpu.memory_space<vmem>>, vector<64x32xf32>
    %cst_85 = arith.constant dense<0.000000e+00> : vector<16x32xf32>
    %214 = tpu.matmul %212, %213, %cst_85 {dimension_numbers = #tpu.dot_dimension_numbers<[1], [0], [0], [1], [0, 0, 1, 1], [], []>} : vector<16x64xf32>, vector<64x32xf32>, vector<16x32xf32> -> vector<16x32xf32>
    %215 = arith.addf %154, %214 : vector<16x32xf32>
    %c0_86 = arith.constant 0 : index
    %c0_87 = arith.constant 0 : index
    %216 = vector.load %arg7[%c0_86, %c0_87] : memref<16x32xf32, #tpu.memory_space<vmem>>, vector<16x32xf32>
    tpu.vector_store %arg7[%c0_86, %c0_87], %215 {strides = array<i32>} : memref<16x32xf32, #tpu.memory_space<vmem>>, vector<16x32xf32>,
    return
  }
}

</mosaic_0001>

<bundles_post_ra>
// kernel: rnn_layer_forward.1
= control target key start
LH: loop header
LB: loop body
LE: loop exit
PB: predicated region body
PF: predicated region fallthrough
CT: control target
= control target key end

     0   :  { %12 = vsyncpa [#allocation3], 0  ;;  %s1573_s0 = inlined_call_operand.vmem [shape: f32[16,32], index: 0, kind: input, shape index: {}]   ;;  %s1574_s1 = inlined_call_operand.hbm [shape: f32[9,64], index: 1, kind: input, shape index: {}]   ;;  %s1575_s2 = inlined_call_operand.vmem [shape: f32[32,64], index: 2, kind: input, shape index: {}]   ;;  %s1576_s3 = inlined_call_operand.vmem [shape: f32[32,64], index: 3, kind: input, shape index: {}]   ;;  %s1577_s4 = inlined_call_operand.vmem [shape: f32[32,32], index: 4, kind: input, shape index: {}]   ;;  %s1578_s5 = inlined_call_operand.hbm [shape: f32[32,128], index: 5, kind: input, shape index: {}]   ;;  %s1579_s6 = inlined_call_operand.vmem [shape: f32[64,32], index: 6, kind: input, shape index: {}]   ;;  %s1580_s7 = inlined_call_operand.hbm [shape: f32[16,32], index: 7, kind: output, shape index: {}]  }
   0x1   :  { %13 = vsyncpa [#allocation6], 0 }
   0x2   :  { %14 = vsyncpa [#allocation4], 0  ;;  %s1242_s24 = smov [#allocation2]   ;;  %s1170_s28 = scalar_lea.hbm %s1574_s1, 256 }
   0x3   :  { %s22_s25 = sshll.u32 %s1242_s24, 4  ;;  %p1171_p0 = scmp.ne.s32.totalorder %s1574_s1, %s1170_s28  ;;  %s23_s25 = int_to_ptr.vmem [resolvable:$true] %s22_s25 }
   0x4   :  { %p1174_p1 = scmp.lt.u32.totalorder %s1170_s28, %s1574_s1 }
   0x6   :  { %p1176_p2 = pnand %p1174_p1, %p1171_p0 }
   0x8   :  { %1179 = shalt.err (!%p1176_p2)
}
   0x9   :  { %s1180_s10 = scalar_lea.vmem %s23_s25, 256  ;;  %p1185_p4 = scmp.lt.s32.totalorder %s23_s25, %s23_s25 }
   0xa   :  { %p1181_p3 = scmp.ne.s32.totalorder %s23_s25, %s1180_s10  ;;  %p1186_p5 = scmp.lt.s32.totalorder %s1180_s10, %s1180_s10 }
   0xc   :  { %p1187_p6 = por %p1186_p5, %p1185_p4 }
   0xe   :  { %p1188_p7 = pnand %p1187_p6, %p1181_p3 }
  0x10   :  { %1191 = shalt.err (!%p1188_p7)
}
  0x11   :  { %s1243_s11 = smov 128   ;;  %s1244_s12 = smov 8  }
  0x12   :  { %28 = dma.hbm_to_vmem [thread:$0]  %s1574_s1, 256, %s23_s25, [#allocation3], %s1243_s11, %s1243_s11, %s1244_s12  }
  0x13   :  { %s1245_s15 = smov [#allocation5]   ;;  %s1192_s19 = scalar_lea.hbm %s1578_s5, 512 }
  0x14   :  { %s40_s16 = sshll.u32 %s1245_s15, 4  ;;  %p1193_p8 = scmp.ne.s32.totalorder %s1578_s5, %s1192_s19  ;;  %s41_s16 = int_to_ptr.vmem [resolvable:$true] %s40_s16 }
  0x15   :  { %p1196_p9 = scmp.lt.u32.totalorder %s1192_s19, %s1578_s5 }
  0x17   :  { %p1198_p10 = pnand %p1196_p9, %p1193_p8 }
  0x19   :  { %1201 = shalt.err (!%p1198_p10)
}
  0x1a   :  { %s1202_s24 = scalar_lea.vmem %s41_s16, 512  ;;  %p1207_p12 = scmp.lt.s32.totalorder %s41_s16, %s41_s16 }
  0x1b   :  { %p1203_p11 = scmp.ne.s32.totalorder %s41_s16, %s1202_s24  ;;  %p1208_p13 = scmp.lt.s32.totalorder %s1202_s24, %s1202_s24 }
  0x1d   :  { %p1209_p0 = por %p1208_p13, %p1207_p12 }
  0x1f   :  { %p1210_p1 = pnand %p1209_p0, %p1203_p11 }
  0x21   :  { %1213 = shalt.err (!%p1210_p1)
}
  0x22   :  { %46 = dma.hbm_to_vmem [thread:$0]  %s1578_s5, 512, %s41_s16, [#allocation6], %s1243_s11, %s1243_s11, %s1244_s12  }
  0x23   :  { %1236 = dma.done.wait [#allocation3], 256  }
  0x24   :  { %1237 = vsyncadd [#allocation3], 4294967040 }
  0x25   :  { %1238 = dma.done.wait [#allocation6], 512  }
  0x26   :  { %1239 = vsyncadd [#allocation6], 4294966784  ;;  %v1324_v0 = vld [vmem:[%s1573_s0] sm:$0xff]  ;;  %vm69_vm0 = vcmask 261120   ;;  %v1329_v1 = vld [vmem:[%s1573_s0 + $0x8] sm:$0xff]  ;;  %s1246_s22 = smov 32   ;;  %v62_v32 = vlaneseq }
  0x27   :  { %v67_v2 = vmul.f32 %v1324_v0, %v1324_v0  ;;  %v68_v3 = vmul.f32 %v1329_v1, %v1329_v1  ;;  %v91_v6 = vld [vmem:[%s1575_s2] sm:$0xff]  ;;  %v92_v7 = vld [vmem:[%s1575_s2 + $0x8] sm:$0xff]  ;;  %v93_v8 = vld [vmem:[%s1575_s2 + $0x10] sm:$0xff]  ;;  %s1249_s21 = smov 64  }
  0x28   :  { %v1073_v9 = vpack.c.bf16 %v92_v7, %v91_v6  ;;  %v94_v10 = vld [vmem:[%s1575_s2 + $0x18] sm:$0xff]  ;;  %v957_v19 = vld [vmem:[#allocation2] ss:$0 sm:$0xff]  ;;  %v244_v26 = vld [vmem:[%s1576_s3 + $0x8] sm:$0xff]  ;;  %v1366_v33 = vshrl.u32 %v62_v32, 7 }
  0x29   :  { %v70_v4 = vsel %vm69_vm0, %v67_v2, 0.0  ;;  %v73_v5 = vsel %vm69_vm0, %v68_v3, 0.0  ;;  %v1077_v11 = vpack.c.bf16 %v94_v10, %v93_v8  ;;  %v243_v25 = vld [vmem:[%s1576_s3] sm:$0xff]  ;;  %v245_v27 = vld [vmem:[%s1576_s3 + $0x10] sm:$0xff]  ;;  %v246_v29 = vld [vmem:[%s1576_s3 + $0x18] sm:$0xff]  ;;  %s1247_s3 = smov 96  }
  0x2a   :  { %71 = vadd.xlane.f32.xlu0 %v70_v4  ;;  %1074 = vmatprep.subr.bf16.mxu1 %v1073_v9  ;;  %v1081_v28 = vpack.c.bf16 %v244_v26, %v243_v25  ;;  %v1085_v30 = vpack.c.bf16 %v246_v29, %v245_v27  ;;  %v968_v31 = vld [vmem:[#allocation2 + $0x3] ss:$0 sm:$0xff]  ;;  %v64_v34 = vadd.s32 8, %v1366_v33  ;;  %v960_v35 = vld [vmem:[#allocation2 + $0x7] ss:$0 sm:$0xff]  ;;  %v1370_v36 = vand.u32 7, %v1366_v33 }
  0x2b   :  { %1076 = vmatpush3.bf16.msra.mxu1 %v1073_v9  ;;  %349 = vrot.lane.b32.xlu1 %v968_v31, %s1246_s22  ;;  %v961_v38 = vld [vmem:[#allocation2 + $0x2] ss:$0 sm:$0xff]  ;;  %vm192_vm1 = vcmp.lt.s32.totalorder %v1366_v33, 1  ;;  %vm210_vm2 = vcmp.lt.s32.totalorder %v1366_v33, 2  ;;  %vm228_vm3 = vcmp.lt.s32.totalorder %v1366_v33, 3  ;;  %vm492_vm14 = vcmp.lt.s32.totalorder %v1366_v33, 4 }
  0x2c   :  { %1078 = vmatprep.subr.bf16.mxu1 %v1077_v11  ;;  %v1372_v37 = vand.u32 7, %v64_v34  ;;  %v962_v45 = vld [vmem:[#allocation2 + $0x6] ss:$0 sm:$0xff]  ;;  %v963_v50 = vld [vmem:[#allocation2 + $0x5] ss:$0 sm:$0xff]  ;;  %vm195_vm4 = vcmp.ge.s32.totalorder %v1370_v36, 1 }
  0x2d   :  { %vm213_vm5 = vcmp.ge.s32.totalorder %v1370_v36, 2  ;;  %v964_v55 = vld [vmem:[#allocation2 + $0x4] ss:$0 sm:$0xff]  ;;  %vm231_vm8 = vcmp.ge.s32.totalorder %v1370_v36, 3  ;;  %vm495_vm15 = vcmp.ge.s32.totalorder %v1370_v36, 4  ;;  %v585_v36 = vld [vmem:[%s1577_s4 + $0x10] sm:$0xff] }
  0x2e   :  { %74 = vadd.xlane.f32.xlu0 %v73_v5  ;;  %vm196_vm6 = vcmp.ge.s32.totalorder %v1372_v37, 1  ;;  %vm214_vm7 = vcmp.ge.s32.totalorder %v1372_v37, 2  ;;  %vm232_vm9 = vcmp.ge.s32.totalorder %v1372_v37, 3 }
  0x2f   :  { %1080 = vmatpush3.bf16.msra.mxu1 %v1077_v11 }
  0x30   :  { %1082 = vmatprep.subr.bf16.mxu1 %v1081_v28 }
  0x9d   :  { %v350_v29 = vpop.permute.xlu1 %349 }
  0xb7   :  { %v72_v12 = vpop.xlane.xlu0 %71 }
  0xb8   :  { %v77_v13 = vmul.f32 0.03125, %v72_v12 }
  0xba   :  { %v79_v14 = vadd.f32 1e-06, %v77_v13 }
  0xbb   :  { %v75_v15 = vpop.xlane.xlu0 %74 }
  0xbc   :  { %1130 = vrsqrt.f32 %v79_v14  ;;  %v78_v16 = vmul.f32 0.03125, %v75_v15 }
  0xbe   :  { %v80_v17 = vadd.f32 1e-06, %v78_v16  ;;  %v965_v16 = vld [vmem:[#allocation2 + $0x8] ss:$0 sm:$0xff] }
  0xc0   :  { %1132 = vrsqrt.f32 %v80_v17 }
  0xc6   :  { %v1131_v18 = vpop.eup %1130 }
  0xc7   :  { %v83_v20 = vmul.f32 %v1131_v18, %v1324_v0 }
  0xc9   :  { %v89_v21 = vmul.f32 %v957_v19, %v83_v20 }
  0xca   :  { %v1133_v22 = vpop.eup %1132 }
  0xcb   :  { %v84_v23 = vmul.f32 %v1133_v22, %v1329_v1  ;;  %1018 = vmatprep.mubr.msk.f32.mxu1 %vm69_vm0, %v89_v21 }
  0xcd   :  { %v90_v24 = vmul.f32 %v957_v19, %v84_v23 }
  0xcf   :  { %1019 = vmatmul.mubr.msk.f32.vlgmr.msra.gmra.mrb[0].mxu1 %vm69_vm0, %v90_v24 }
  0xd0   :  { %1084 = vmatpush3.bf16.msra.mxu1 %v1081_v28 }
  0xd1   :  { %1086 = vmatprep.subr.bf16.mxu1 %v1085_v30 }
  0xd4   :  { %1088 = vmatpush3.bf16.msra.mxu1 %v1085_v30 }
 0x1a2   :  { %v1374_v39 = vpop.f32.mrb[0].mxu1 }
 0x1a3   :  { %v182_v40 = vmul.f32 %v1374_v39, %v960_v35  ;;  %v191_v41 = vrot.slane %v1374_v39, 7  ;;  %v209_v42 = vrot.slane %v1374_v39, 6  ;;  %v227_v43 = vrot.slane %v1374_v39, 5  ;;  %v1383_v44 = vpop.f32.mrb[1].mxu1 }
 0x1a4   :  { %v181_v46 = vmul.f32 %v960_v35, %v1383_v44  ;;  %v190_v47 = vrot.slane %v1383_v44, 7  ;;  %v208_v48 = vrot.slane %v1383_v44, 6  ;;  %v226_v49 = vrot.slane %v1383_v44, 5 }
 0x1a5   :  { %v188_v51 = vadd.f32 %v961_v38, %v182_v40 }
 0x1a6   :  { %v193_v52 = vsel %vm192_vm1, %v190_v47, %v191_v41  ;;  %v194_v53 = vsel %vm192_vm1, %v191_v41, %v190_v47  ;;  %v211_v54 = vsel %vm210_vm2, %v208_v48, %v209_v42  ;;  %v212_v58 = vsel %vm210_vm2, %v209_v42, %v208_v48 }
 0x1a7   :  { %v201_v56 = vmul.f32 %v962_v45, %v194_v53  ;;  %v202_v57 = vmul.f32 %v962_v45, %v193_v52  ;;  %v220_v59 = vmul.f32 %v963_v50, %v211_v54  ;;  %v187_v60 = vadd.f32 %v961_v38, %v181_v46 }
 0x1a8   :  { %v219_v61 = vmul.f32 %v963_v50, %v212_v58  ;;  %v229_v62 = vsel %vm228_vm3, %v226_v49, %v227_v43  ;;  %v230_v63 = vsel %vm228_vm3, %v227_v43, %v226_v49 }
 0x1a9   :  { %v203_v2 = vsel %vm195_vm4, %v201_v56, 0.0  ;;  %v237_v3 = vmul.f32 %v964_v55, %v230_v63  ;;  %v238_v4 = vmul.f32 %v964_v55, %v229_v62  ;;  %v204_v5 = vsel %vm196_vm6, %v202_v57, 0.0 }
 0x1aa   :  { %v205_v6 = vadd.f32 %v203_v2, %v187_v60  ;;  %v206_v7 = vadd.f32 %v204_v5, %v188_v51  ;;  %v221_v8 = vsel %vm213_vm5, %v219_v61, 0.0  ;;  %v222_v9 = vsel %vm214_vm7, %v220_v59, 0.0 }
 0x1ab   :  { %v239_v12 = vsel %vm231_vm8, %v237_v3, 0.0  ;;  %v240_v13 = vsel %vm232_vm9, %v238_v4, 0.0 }
 0x1ac   :  { %v223_v10 = vadd.f32 %v221_v8, %v205_v6  ;;  %v224_v11 = vadd.f32 %v222_v9, %v206_v7 }
 0x1ae   :  { %v241_v14 = vadd.f32 %v239_v12, %v223_v10  ;;  %v242_v15 = vadd.f32 %v240_v13, %v224_v11 }
 0x1b0   :  { %1029 = vmatprep.mubr.msk.f32.mxu1 %vm69_vm0, %v241_v14 }
 0x1b1   :  { %1030 = vmatmul.mubr.msk.f32.vlgmr.msra.gmra.mrb[2].mxu1 %vm69_vm0, %v242_v15 }
 0x284   :  { %v1031_v17 = vpop.f32.mrb[2].mxu1 }
 0x285   :  { %v329_v18 = vadd.f32 %v1031_v17, %v965_v16  ;;  %v323_v19 = vpop.f32.mrb[3].mxu1 }
 0x286   :  { %v324_v20 = vadd.f32 %v965_v16, %v323_v19 }
 0x287   :  { %v333_v21 = vsub.f32 0.0, %v329_v18 }
 0x288   :  { %v332_v22 = vsub.f32 0.0, %v324_v20 }
 0x289   :  { %v336_v23 = vmul.f32 1.442695, %v333_v21 }
 0x28a   :  { %v334_v24 = vmul.f32 1.442695, %v332_v22 }
 0x28b   :  { %1134 = vpow2.f32 %v336_v23 }
 0x28c   :  { %1136 = vpow2.f32 %v334_v24 }
 0x295   :  { %v1135_v25 = vpop.eup %1134 }
 0x296   :  { %v1137_v26 = vpop.eup %1136  ;;  %v339_v27 = vadd.f32 1.0, %v1135_v25 }
 0x297   :  { %v338_v28 = vadd.f32 1.0, %v1137_v26 }
 0x298   :  { %1138 = vrcp.f32 %v339_v27 }
 0x299   :  { %1140 = vrcp.f32 %v338_v28 }
 0x2a2   :  { %v1139_v30 = vpop.eup %1138 }
 0x2a3   :  { %v1141_v31 = vpop.eup %1140  ;;  %v353_v32 = vmul.f32 %v1139_v30, %v350_v29  ;;  %v359_v59 = vmul.f32 %v1139_v30, %v242_v15 }
 0x2a4   :  { %v352_v34 = vmul.f32 %v1141_v31, %v350_v29  ;;  %v358_v61 = vmul.f32 %v1141_v31, %v241_v14 }
 0x2a5   :  { %v356_v35 = vmul.f32 1.442695, %v353_v32 }
 0x2a6   :  { %v354_v38 = vmul.f32 1.442695, %v352_v34 }
 0x2a7   :  { %1142 = vpow2.f32 %v356_v35 }
 0x2a8   :  { %1144 = vpow2.f32 %v354_v38 }
 0x2b1   :  { %v1417_v40 = vpop.eup %1142 }
 0x2b2   :  { %v1419_v41 = vpop.eup %1144  ;;  %v361_v42 = vmul.f32 %v1417_v40, %v1417_v40 }
 0x2b3   :  { %v360_v43 = vmul.f32 %v1419_v41, %v1419_v41 }
 0x2b4   :  { %v363_v45 = vsub.f32 1.0, %v361_v42 }
 0x2b5   :  { %v362_v46 = vsub.f32 1.0, %v360_v43 }
 0x2b6   :  { %v365_v47 = vmax.f32 %v363_v45, 0.0 }
 0x2b7   :  { %v364_v48 = vmax.f32 %v362_v46, 0.0 }
 0x2b8   :  { %1146 = vrsqrt.f32 %v365_v47  ;;  %vm375_vm10 = vcmp.eq.f32.partialorder %v365_v47, inf  ;;  %v378_v52 = vand.u32 2147483648, %v365_v47  ;;  %vm377_vm11 = vcmp.eq.f32.partialorder %v365_v47, 0.0 }
 0x2b9   :  { %1148 = vrsqrt.f32 %v364_v48  ;;  %vm368_vm12 = vcmp.eq.f32.partialorder %v364_v48, inf  ;;  %v371_v55 = vand.u32 2147483648, %v364_v48  ;;  %vm370_vm13 = vcmp.eq.f32.partialorder %v364_v48, 0.0 }
 0x2c2   :  { %v1147_v49 = vpop.eup %1146 }
 0x2c3   :  { %v1149_v50 = vpop.eup %1148  ;;  %v374_v51 = vmul.f32 %v1147_v49, %v365_v47 }
 0x2c4   :  { %v367_v53 = vmul.f32 %v1149_v50, %v364_v48 }
 0x2c5   :  { %v376_v54 = vsel %vm375_vm10, %v365_v47, %v374_v51 }
 0x2c6   :  { %v379_v56 = vsel %vm377_vm11, %v378_v52, %v376_v54  ;;  %v369_v57 = vsel %vm368_vm12, %v364_v48, %v367_v53 }
 0x2c7   :  { %384 = vrot.lane.b32.xlu0 %v379_v56, %s1247_s3  ;;  %v372_v58 = vsel %vm370_vm13, %v371_v55, %v369_v57 }
 0x2c8   :  { %382 = vrot.lane.b32.xlu1 %v372_v58, %s1247_s3 }
 0x339   :  { %v385_v60 = vpop.permute.xlu0 %384 }
 0x33a   :  { %v389_v62 = vmul.f32 %v385_v60, %v359_v59  ;;  %v383_v63 = vpop.permute.xlu1 %382 }
 0x33b   :  { %v388_v2 = vmul.f32 %v383_v63, %v358_v61 }
 0x33c   :  { %v403_v3 = vrot.slane %v389_v62, 7 }
 0x33d   :  { %v402_v4 = vrot.slane %v388_v2, 7 }
 0x33f   :  { %v405_v5 = vsel %vm192_vm1, %v403_v3, %v402_v4  ;;  %v404_v6 = vsel %vm192_vm1, %v402_v4, %v403_v3 }
 0x340   :  { %408 = vrot.lane.b32.xlu1 %v405_v5, %s1246_s22 }
 0x344   :  { %410 = vrot.lane.b32.xlu1 %v404_v6, %s1246_s22 }
 0x348   :  { %392 = vrot.lane.b32.xlu1 %v1419_v41, %s1247_s3 }
 0x34c   :  { %394 = vrot.lane.b32.xlu1 %v1417_v40, %s1247_s3 }
 0x3b2   :  { %v409_v7 = vpop.permute.xlu1 %408 }
 0x3b3   :  { %v414_v8 = vmul.f32 %v1419_v41, %v409_v7  ;;  %v583_v7 = vld [vmem:[%s1577_s4] sm:$0xff] }
 0x3b5   :  { %v416_v9 = vsel %vm195_vm4, %v414_v8, 0.0  ;;  %v584_v8 = vld [vmem:[%s1577_s4 + $0x8] sm:$0xff] }
 0x3b6   :  { %420 = vrot.lane.b32.xlu1 %v416_v9, %s1247_s3  ;;  %v411_v10 = vpop.permute.xlu1 %410  ;;  %v586_v9 = vld [vmem:[%s1577_s4 + $0x18] sm:$0xff] }
 0x3b7   :  { %v415_v11 = vmul.f32 %v1417_v40, %v411_v10  ;;  %v1093_v10 = vpack.c.bf16 %v586_v9, %v585_v36 }
 0x3b9   :  { %v417_v12 = vsel %vm196_vm6, %v415_v11, 0.0 }
 0x3ba   :  { %422 = vrot.lane.b32.xlu1 %v417_v12, %s1247_s3  ;;  %v393_v13 = vpop.permute.xlu1 %392 }
 0x3bb   :  { %v398_v15 = vrot.slane %v393_v13, 7 }
 0x3be   :  { %v395_v14 = vpop.permute.xlu1 %394 }
 0x3bf   :  { %v399_v16 = vrot.slane %v395_v14, 7 }
 0x3c1   :  { %v401_v17 = vsel %vm192_vm1, %v399_v16, %v398_v15  ;;  %v400_v18 = vsel %vm192_vm1, %v398_v15, %v399_v16  ;;  %vm496_vm1 = vcmp.ge.s32.totalorder %v1372_v37, 4  ;;  %v1089_v37 = vpack.c.bf16 %v584_v8, %v583_v7 }
 0x3c2   :  { %v428_v19 = vsel %vm195_vm4, %v401_v17, 1.0  ;;  %v429_v20 = vsel %vm196_vm6, %v400_v18, 1.0  ;;  %v521_v15 = vmul.f32 0.70710677, %v1383_v44  ;;  %v522_v16 = vmul.f32 0.70710677, %v1374_v39 }
 0x3c3   :  { %432 = vrot.lane.b32.xlu0 %v428_v19, %s1246_s22  ;;  %434 = vrot.lane.b32.xlu1 %v429_v20, %s1246_s22  ;;  %vm853_vm6 = vcmask 523264  }
 0x3c4   :  { %1090 = vmatprep.subr.bf16.mxu0 %v1089_v37  ;;  %v527_v17 = vand.u32 2147483647, %v521_v15  ;;  %v528_v18 = vand.u32 2147483647, %v522_v16  ;;  %vm524_vm3 = vcmp.lt.f32.partialorder %v522_v16, 0.0 }
 0x3c5   :  { %1092 = vmatpush3.bf16.msra.mxu0 %v1089_v37 }
 0x3c6   :  { %1094 = vmatprep.subr.bf16.mxu0 %v1093_v10  ;;  %v529_v19 = vmul.f32 0.3275911, %v527_v17  ;;  %v530_v20 = vmul.f32 0.3275911, %v528_v18 }
 0x3c9   :  { %1096 = vmatpush3.bf16.msra.mxu0 %v1093_v10 }
 0x428   :  { %v421_v21 = vpop.permute.xlu1 %420 }
 0x429   :  { %v426_v22 = vadd.f32 %v421_v21, %v388_v2  ;;  %v531_v21 = vadd.f32 1.0, %v529_v19  ;;  %v697_v19 = vld [vmem:[#allocation5 + $0x8] sm:$0xff] }
 0x42b   :  { %v452_v25 = vrot.slane %v426_v22, 6  ;;  %1150 = vrcp.f32 %v531_v21  ;;  %v699_v21 = vld [vmem:[#allocation5 + $0x18] sm:$0xff] }
 0x42c   :  { %v423_v23 = vpop.permute.xlu1 %422 }
 0x42d   :  { %v427_v24 = vadd.f32 %v423_v23, %v389_v62 }
 0x42f   :  { %v453_v26 = vrot.slane %v427_v24, 6 }
 0x431   :  { %v455_v27 = vsel %vm210_vm2, %v453_v26, %v452_v25  ;;  %v454_v28 = vsel %vm210_vm2, %v452_v25, %v453_v26 }
 0x432   :  { %458 = vrot.lane.b32.xlu0 %v455_v27, %s1246_s22  ;;  %460 = vrot.lane.b32.xlu1 %v454_v28, %s1246_s22 }
 0x435   :  { %v433_v29 = vpop.permute.xlu0 %432  ;;  %v435_v30 = vpop.permute.xlu1 %434 }
 0x436   :  { %v438_v31 = vmul.f32 %v1419_v41, %v433_v29  ;;  %v439_v32 = vmul.f32 %v1417_v40, %v435_v30  ;;  %v1151_v23 = vpop.eup %1150 }
 0x437   :  { %v537_v25 = vmul.f32 1.0614054, %v1151_v23 }
 0x438   :  { %442 = vrot.lane.b32.xlu0 %v438_v31, %s1247_s3  ;;  %444 = vrot.lane.b32.xlu1 %v439_v32, %s1247_s3 }
 0x439   :  { %v539_v27 = vadd.f32 -1.4531521, %v537_v25 }
 0x43b   :  { %v541_v29 = vmul.f32 %v1151_v23, %v539_v27 }
 0x4a4   :  { %v459_v34 = vpop.permute.xlu0 %458  ;;  %v461_v35 = vpop.permute.xlu1 %460 }
 0x4a5   :  { %v464_v38 = vmul.f32 %v459_v34, %v438_v31  ;;  %v465_v42 = vmul.f32 %v461_v35, %v439_v32  ;;  %v556_v35 = vsub.f32 0.0, %v528_v18 }
 0x4a7   :  { %v466_v43 = vsel %vm213_vm5, %v464_v38, 0.0  ;;  %v467_v45 = vsel %vm214_vm7, %v465_v42, 0.0 }
 0x4a8   :  { %470 = vrot.lane.b32.xlu0 %v466_v43, %s1247_s3  ;;  %472 = vrot.lane.b32.xlu1 %v467_v45, %s1247_s3  ;;  %v558_v45 = vmul.f32 %v556_v35, %v528_v18  ;;  %v696_v18 = vld [vmem:[#allocation5] sm:$0xff] }
 0x4aa   :  { %v443_v41 = vpop.permute.xlu0 %442  ;;  %v445_v40 = vpop.permute.xlu1 %444 }
 0x4ab   :  { %v448_v46 = vrot.slane %v443_v41, 6  ;;  %v449_v47 = vrot.slane %v445_v40, 6 }
 0x4ad   :  { %v451_v48 = vsel %vm210_vm2, %v449_v47, %v448_v46  ;;  %v450_v49 = vsel %vm210_vm2, %v448_v46, %v449_v47  ;;  %v561_v47 = vmul.f32 1.442695, %v558_v45  ;;  %vm523_vm2 = vcmp.lt.f32.partialorder %v521_v15, 0.0 }
 0x4ae   :  { %v478_v50 = vsel %vm213_vm5, %v451_v48, 1.0  ;;  %v479_v51 = vsel %vm214_vm7, %v450_v49, 1.0 }
 0x4af   :  { %482 = vrot.lane.b32.xlu0 %v478_v50, %s1246_s22  ;;  %484 = vrot.lane.b32.xlu1 %v479_v51, %s1246_s22 }
 0x51a   :  { %v471_v52 = vpop.permute.xlu0 %470  ;;  %v473_v53 = vpop.permute.xlu1 %472 }
 0x51b   :  { %v476_v54 = vadd.f32 %v471_v52, %v426_v22  ;;  %v477_v55 = vadd.f32 %v473_v53, %v427_v24  ;;  %v532_v22 = vadd.f32 1.0, %v530_v20  ;;  %v1097_v20 = vpack.c.bf16 %v697_v19, %v696_v18 }
 0x51d   :  { %v490_v56 = vrot.slane %v476_v54, 4  ;;  %v491_v57 = vrot.slane %v477_v55, 4  ;;  %1152 = vrcp.f32 %v532_v22  ;;  %1098 = vmatprep.subr.bf16.mxu1 %v1097_v20 }
 0x51e   :  { %1100 = vmatpush3.bf16.msra.mxu1 %v1097_v20 }
 0x51f   :  { %v494_v58 = vsel %vm492_vm14, %v491_v57, %v490_v56  ;;  %v493_v59 = vsel %vm492_vm14, %v490_v56, %v491_v57 }
 0x520   :  { %499 = vrot.lane.b32.xlu0 %v494_v58, %s1246_s22  ;;  %501 = vrot.lane.b32.xlu1 %v493_v59, %s1246_s22 }
 0x521   :  { %v483_v60 = vpop.permute.xlu0 %482  ;;  %v485_v61 = vpop.permute.xlu1 %484 }
 0x522   :  { %v488_v62 = vmul.f32 %v483_v60, %v438_v31  ;;  %v489_v63 = vmul.f32 %v485_v61, %v439_v32  ;;  %v543_v31 = vadd.f32 1.4214138, %v541_v29  ;;  %v555_v32 = vsub.f32 0.0, %v527_v17 }
 0x523   :  { %v1248_v60 = vmov 1.0  }
 0x524   :  { %v545_v38 = vmul.f32 %v1151_v23, %v543_v31  ;;  %v557_v42 = vmul.f32 %v555_v32, %v527_v17  ;;  %v525_v61 = vsel %vm523_vm2, -1.0, %v1248_v60 }
 0x526   :  { %v547_v41 = vadd.f32 -0.28449672, %v545_v38  ;;  %v559_v40 = vmul.f32 1.442695, %v557_v42  ;;  %v845_v38 = vld [vmem:[%s1579_s6] sm:$0xff]  ;;  %v846_v42 = vld [vmem:[%s1579_s6 + $0x8] sm:$0xff] }
 0x527   :  { %v1153_v24 = vpop.eup %1152  ;;  %v1105_v45 = vpack.c.bf16 %v846_v42, %v845_v38 }
 0x528   :  { %v538_v26 = vmul.f32 1.0614054, %v1153_v24  ;;  %v549_v48 = vmul.f32 %v1151_v23, %v547_v41  ;;  %1154 = vpow2.f32 %v559_v40  ;;  %v848_v41 = vld [vmem:[%s1579_s6 + $0x18] sm:$0xff] }
 0x529   :  { %1156 = vpow2.f32 %v561_v47  ;;  %v850_v47 = vld [vmem:[%s1579_s6 + $0x28] sm:$0xff]  ;;  %1106 = vmatprep.subr.bf16.mxu0 %v1105_v45 }
 0x52a   :  { %v540_v28 = vadd.f32 -1.4531521, %v538_v26  ;;  %v551_v50 = vadd.f32 0.2548296, %v549_v48 }
 0x52c   :  { %v542_v30 = vmul.f32 %v1153_v24, %v540_v28  ;;  %v553_v52 = vmul.f32 %v1151_v23, %v551_v50  ;;  %v852_v50 = vld [vmem:[%s1579_s6 + $0x38] sm:$0xff] }
 0x52e   :  { %v544_v34 = vadd.f32 1.4214138, %v542_v30  ;;  %v971_v30 = vld [vmem:[#allocation2 + $0x1] ss:$0 sm:$0xff] }
 0x530   :  { %v546_v43 = vmul.f32 %v1153_v24, %v544_v34 }
 0x532   :  { %v548_v46 = vadd.f32 -0.28449672, %v546_v43  ;;  %v847_v43 = vld [vmem:[%s1579_s6 + $0x10] sm:$0xff] }
 0x533   :  { %v1109_v40 = vpack.c.bf16 %v848_v41, %v847_v43 }
 0x534   :  { %v550_v49 = vmul.f32 %v1153_v24, %v548_v46  ;;  %v849_v46 = vld [vmem:[%s1579_s6 + $0x20] sm:$0xff] }
 0x535   :  { %v1113_v48 = vpack.c.bf16 %v850_v47, %v849_v46 }
 0x536   :  { %v552_v51 = vadd.f32 0.2548296, %v550_v49  ;;  %v851_v49 = vld [vmem:[%s1579_s6 + $0x30] sm:$0xff]  ;;  %s1250_s6 = smov [#allocation7]  }
 0x538   :  { %v554_v53 = vmul.f32 %v1153_v24, %v552_v51  ;;  %v1117_v51 = vpack.c.bf16 %v852_v50, %v851_v49 }
 0x592   :  { %v500_v2 = vpop.permute.xlu0 %499  ;;  %v502_v3 = vpop.permute.xlu1 %501 }
 0x593   :  { %v505_v4 = vmul.f32 %v500_v2, %v488_v62  ;;  %v506_v33 = vmul.f32 %v502_v3, %v489_v63  ;;  %v526_v62 = vsel %vm524_vm3, -1.0, %v1248_v60 }
 0x595   :  { %v507_v5 = vsel %vm495_vm15, %v505_v4, 0.0  ;;  %v508_v6 = vsel %vm496_vm1, %v506_v33, 0.0  ;;  %v519_v33 = vmul.f32 0.5, %v1383_v44 }
 0x596   :  { %511 = vrot.lane.b32.xlu0 %v507_v5, %s1247_s3  ;;  %513 = vrot.lane.b32.xlu1 %v508_v6, %s1247_s3  ;;  %v520_v5 = vmul.f32 0.5, %v1374_v39 }
 0x608   :  { %v512_v11 = vpop.permute.xlu0 %511  ;;  %v514_v12 = vpop.permute.xlu1 %513 }
 0x609   :  { %v517_v13 = vadd.f32 %v512_v11, %v476_v54  ;;  %v518_v14 = vadd.f32 %v514_v12, %v477_v55  ;;  %v1155_v54 = vpop.eup %1154 }
 0x60a   :  { %v1157_v55 = vpop.eup %1156  ;;  %v563_v56 = vmul.f32 %v1155_v54, %v553_v52 }
 0x60b   :  { %575 = vrot.lane.b32.xlu0 %v517_v13, %s1246_s22  ;;  %577 = vrot.lane.b32.xlu1 %v518_v14, %s1246_s22  ;;  %v564_v57 = vmul.f32 %v1157_v55, %v554_v53  ;;  %s944_s22 = sshll.u32 %s1250_s6, 4  ;;  %s945_s22 = int_to_ptr.vmem [resolvable:$true] %s944_s22 }
 0x60c   :  { %v565_v58 = vsub.f32 1.0, %v563_v56  ;;  %p1219_p3 = scmp.lt.s32.totalorder %s945_s22, %s945_s22 }
 0x60d   :  { %v566_v59 = vsub.f32 1.0, %v564_v57 }
 0x60e   :  { %v567_v63 = vmul.f32 %v565_v58, %v525_v61 }
 0x60f   :  { %v568_v2 = vmul.f32 %v566_v59, %v526_v62 }
 0x610   :  { %v569_v3 = vadd.f32 1.0, %v567_v63 }
 0x611   :  { %v570_v4 = vadd.f32 1.0, %v568_v2 }
 0x612   :  { %v571_v6 = vmul.f32 %v569_v3, %v519_v33 }
 0x613   :  { %v572_v7 = vmul.f32 %v570_v4, %v520_v5 }
 0x67d   :  { %v576_v8 = vpop.permute.xlu0 %575  ;;  %v578_v36 = vpop.permute.xlu1 %577 }
 0x67e   :  { %v581_v37 = vmul.f32 %v576_v8, %v571_v6  ;;  %v582_v9 = vmul.f32 %v578_v36, %v572_v7 }
 0x680   :  { %589 = vrot.lane.b32.xlu0 %v581_v37, %s1247_s3  ;;  %591 = vrot.lane.b32.xlu1 %v582_v9, %s1247_s3  ;;  %s1214_s3 = scalar_lea.vmem %s945_s22, 256 }
 0x681   :  { %p1215_p2 = scmp.ne.s32.totalorder %s945_s22, %s1214_s3  ;;  %p1220_p4 = scmp.lt.s32.totalorder %s1214_s3, %s1214_s3 }
 0x683   :  { %p1221_p5 = por %p1220_p4, %p1219_p3 }
 0x685   :  { %p1222_p6 = pnand %p1221_p5, %p1215_p2 }
 0x6f2   :  { %v590_v10 = vpop.permute.xlu0 %589  ;;  %v592_v11 = vpop.permute.xlu1 %591 }
 0x6f3   :  { %1040 = vmatprep.mubr.msk.f32.mxu0 %vm69_vm0, %v590_v10 }
 0x6f4   :  { %1041 = vmatmul.mubr.msk.f32.vlgmr.msra.gmra.mrb[0].mxu0 %vm69_vm0, %v592_v11 }
 0x6f5   :  { %1108 = vmatpush3.bf16.msra.mxu0 %v1105_v45 }
 0x6f6   :  { %1110 = vmatprep.subr.bf16.mxu0 %v1109_v40 }
 0x6f9   :  { %1112 = vmatpush3.bf16.msra.mxu0 %v1109_v40 }
 0x6fa   :  { %1114 = vmatprep.subr.bf16.mxu0 %v1113_v48 }
 0x6fd   :  { %1116 = vmatpush3.bf16.msra.mxu0 %v1113_v48 }
 0x6fe   :  { %1118 = vmatprep.subr.bf16.mxu0 %v1117_v51 }
 0x701   :  { %1120 = vmatpush3.bf16.msra.mxu0 %v1117_v51 }
 0x7c7   :  { %v1042_v12 = vpop.f32.mrb[0].mxu0 }
 0x7c8   :  { %v1513_v44 = vadd.f32 %v1042_v12, %v1329_v1  ;;  %v663_v39 = vpop.f32.mrb[1].mxu0  ;;  %v698_v1 = vld [vmem:[#allocation5 + $0x10] sm:$0xff] }
 0x7c9   :  { %v1516_v13 = vadd.f32 %v663_v39, %v1324_v0  ;;  %v1101_v22 = vpack.c.bf16 %v699_v21, %v698_v1 }
 0x7ca   :  { %v675_v14 = vmul.f32 %v1513_v44, %v1513_v44 }
 0x7cb   :  { %v674_v15 = vmul.f32 %v1516_v13, %v1516_v13  ;;  %1102 = vmatprep.subr.bf16.mxu1 %v1101_v22 }
 0x7cc   :  { %v679_v16 = vsel %vm69_vm0, %v675_v14, 0.0  ;;  %1104 = vmatpush3.bf16.msra.mxu1 %v1101_v22 }
 0x7cd   :  { %680 = vadd.xlane.f32.xlu1 %v679_v16  ;;  %v676_v17 = vsel %vm69_vm0, %v674_v15, 0.0 }
 0x7ce   :  { %677 = vadd.xlane.f32.xlu0 %v676_v17 }
 0x85a   :  { %v681_v0 = vpop.xlane.xlu1 %680 }
 0x85b   :  { %v683_v23 = vmul.f32 0.03125, %v681_v0  ;;  %v678_v24 = vpop.xlane.xlu0 %677 }
 0x85c   :  { %v682_v25 = vmul.f32 0.03125, %v678_v24 }
 0x85d   :  { %v685_v26 = vadd.f32 1e-06, %v683_v23 }
 0x85e   :  { %v684_v27 = vadd.f32 1e-06, %v682_v25 }
 0x85f   :  { %1158 = vrsqrt.f32 %v685_v26 }
 0x860   :  { %1160 = vrsqrt.f32 %v684_v27 }
 0x869   :  { %v1159_v28 = vpop.eup %1158 }
 0x86a   :  { %v1161_v29 = vpop.eup %1160  ;;  %v689_v31 = vmul.f32 %v1159_v28, %v1513_v44 }
 0x86b   :  { %v688_v32 = vmul.f32 %v1161_v29, %v1516_v13 }
 0x86c   :  { %v695_v35 = vmul.f32 %v971_v30, %v689_v31 }
 0x86d   :  { %v694_v34 = vmul.f32 %v971_v30, %v688_v32 }
 0x86f   :  { %1051 = vmatprep.mubr.msk.f32.mxu1 %vm69_vm0, %v694_v34 }
 0x870   :  { %1052 = vmatmul.mubr.msk.f32.vlgmr.msra.gmra.mrb[4].mxu1 %vm69_vm0, %v695_v35 }
 0x943   :  { %v1053_v52 = vpop.f32.mrb[4].mxu1 }
 0x944   :  { %839 = vrot.lane.b32.xlu1 %v1053_v52, %s1249_s21  ;;  %v772_v53 = vpop.f32.mrb[5].mxu1  ;;  %v784_v55 = vmul.f32 0.70710677, %v1053_v52  ;;  %v782_v38 = vmul.f32 0.5, %v1053_v52 }
 0x945   :  { %837 = vrot.lane.b32.xlu0 %v772_v53, %s1249_s21  ;;  %v783_v54 = vmul.f32 0.70710677, %v772_v53  ;;  %v781_v35 = vmul.f32 0.5, %v772_v53 }
 0x946   :  { %v790_v57 = vand.u32 2147483647, %v784_v55  ;;  %vm786_vm5 = vcmp.lt.f32.partialorder %v784_v55, 0.0 }
 0x947   :  { %v789_v56 = vand.u32 2147483647, %v783_v54  ;;  %vm785_vm4 = vcmp.lt.f32.partialorder %v783_v54, 0.0  ;;  %v788_v29 = vsel %vm786_vm5, -1.0, %v1248_v60 }
 0x948   :  { %v792_v59 = vmul.f32 0.3275911, %v790_v57  ;;  %v818_v9 = vsub.f32 0.0, %v790_v57  ;;  %v787_v28 = vsel %vm785_vm4, -1.0, %v1248_v60 }
 0x949   :  { %v791_v58 = vmul.f32 0.3275911, %v789_v56  ;;  %v817_v36 = vsub.f32 0.0, %v789_v56 }
 0x94a   :  { %v794_v62 = vadd.f32 1.0, %v792_v59  ;;  %v820_v39 = vmul.f32 %v818_v9, %v790_v57 }
 0x94b   :  { %v793_v61 = vadd.f32 1.0, %v791_v58  ;;  %v819_v11 = vmul.f32 %v817_v36, %v789_v56 }
 0x94c   :  { %v823_v17 = vmul.f32 1.442695, %v820_v39 }
 0x94d   :  { %1162 = vrcp.f32 %v793_v61  ;;  %v821_v15 = vmul.f32 1.442695, %v819_v11 }
 0x94e   :  { %1164 = vrcp.f32 %v794_v62 }
 0x94f   :  { %1166 = vpow2.f32 %v821_v15 }
 0x950   :  { %1168 = vpow2.f32 %v823_v17 }
 0x957   :  { %v1163_v63 = vpop.eup %1162 }
 0x958   :  { %v1165_v2 = vpop.eup %1164  ;;  %v799_v3 = vmul.f32 1.0614054, %v1163_v63 }
 0x959   :  { %v800_v4 = vmul.f32 1.0614054, %v1165_v2  ;;  %v1167_v0 = vpop.eup %1166 }
 0x95a   :  { %v801_v33 = vadd.f32 -1.4531521, %v799_v3  ;;  %v1169_v23 = vpop.eup %1168 }
 0x95b   :  { %v802_v5 = vadd.f32 -1.4531521, %v800_v4 }
 0x95c   :  { %v803_v6 = vmul.f32 %v1163_v63, %v801_v33 }
 0x95d   :  { %v804_v7 = vmul.f32 %v1165_v2, %v802_v5 }
 0x95e   :  { %v805_v8 = vadd.f32 1.4214138, %v803_v6 }
 0x95f   :  { %v806_v37 = vadd.f32 1.4214138, %v804_v7 }
 0x960   :  { %v807_v10 = vmul.f32 %v1163_v63, %v805_v8 }
 0x961   :  { %v808_v12 = vmul.f32 %v1165_v2, %v806_v37 }
 0x962   :  { %v809_v14 = vadd.f32 -0.28449672, %v807_v10 }
 0x963   :  { %v810_v16 = vadd.f32 -0.28449672, %v808_v12 }
 0x964   :  { %v811_v18 = vmul.f32 %v1163_v63, %v809_v14 }
 0x965   :  { %v812_v19 = vmul.f32 %v1165_v2, %v810_v16 }
 0x966   :  { %v813_v1 = vadd.f32 0.2548296, %v811_v18 }
 0x967   :  { %v814_v20 = vadd.f32 0.2548296, %v812_v19 }
 0x968   :  { %v815_v21 = vmul.f32 %v1163_v63, %v813_v1 }
 0x969   :  { %v816_v22 = vmul.f32 %v1165_v2, %v814_v20 }
 0x96a   :  { %v825_v24 = vmul.f32 %v1167_v0, %v815_v21 }
 0x96b   :  { %v826_v25 = vmul.f32 %v1169_v23, %v816_v22 }
 0x96c   :  { %v827_v26 = vsub.f32 1.0, %v825_v24 }
 0x96d   :  { %v828_v27 = vsub.f32 1.0, %v826_v25 }
 0x96e   :  { %v829_v30 = vmul.f32 %v827_v26, %v787_v28 }
 0x96f   :  { %v830_v31 = vmul.f32 %v828_v27, %v788_v29 }
 0x970   :  { %v831_v32 = vadd.f32 1.0, %v829_v30 }
 0x971   :  { %v832_v34 = vadd.f32 1.0, %v830_v31 }
 0x972   :  { %v833_v43 = vmul.f32 %v831_v32, %v781_v35 }
 0x973   :  { %v834_v45 = vmul.f32 %v832_v34, %v782_v38 }
 0x9b6   :  { %v840_v42 = vpop.permute.xlu1 %839 }
 0x9b7   :  { %v838_v41 = vpop.permute.xlu0 %837  ;;  %v844_v46 = vmul.f32 %v840_v42, %v834_v45 }
 0x9b8   :  { %v843_v40 = vmul.f32 %v838_v41, %v833_v43 }
 0x9ba   :  { %1070 = vmatprep.mubr.msk.f32.mxu0 %vm853_vm6, %v843_v40 }
 0x9bb   :  { %1071 = vmatmul.mubr.msk.f32.vlgmr.msra.gmra.mrb[2].mxu0 %vm853_vm6, %v844_v46 }
 0xa8e   :  { %v1072_v47 = vpop.f32.mrb[2].mxu0 }
 0xa8f   :  { %v936_v60 = vadd.f32 %v1072_v47, %v1513_v44  ;;  %v926_v48 = vpop.f32.mrb[3].mxu0 }
 0xa90   :  { %v935_v49 = vadd.f32 %v926_v48, %v1516_v13 }
 0xa91   :  { %938 = vst.msk [vmem:[#allocation7 + $0x8] sm:$0xff] %vm69_vm0, %v936_v60 }
 0xa92   :  { %937 = vst.msk [vmem:[#allocation7] sm:$0xff] %vm69_vm0, %v935_v49 }
 0xa93   :  { %1225 = shalt.err (!%p1222_p6)
}
 0xa94   :  { %s1226_s1 = scalar_lea.hbm %s1580_s7, 256 }
 0xa95   :  { %p1227_p7 = scmp.ne.s32.totalorder %s1580_s7, %s1226_s1  ;;  %p1230_p8 = scmp.lt.u32.totalorder %s1226_s1, %s1580_s7 }
 0xa97   :  { %p1232_p9 = pnand %p1230_p8, %p1227_p7 }
 0xa99   :  { %1235 = shalt.err (!%p1232_p9)
}
 0xa9a   :  { %950 = dma.vmem_to_hbm [thread:$0]  %s945_s22, 256, %s1580_s7, [#allocation4], %s1243_s11, %s1243_s11, %s1244_s12  }
 0xa9b   :  { %1240 = dma.done.wait [#allocation4], 256  }
 0xa9c   :  { %1241 = vsyncadd [#allocation4], 4294967040 }
 0xa9d   :  { %954 = vsyncpa [#allocation3], 1 }
 0xa9e   :  { %955 = vsyncpa [#allocation6], 1 }
 0xa9f   :  { %956 = vsyncpa [#allocation4], 1 }

</bundles_post_ra>
